<compile_context>
chip_gen: v7x
topology: tpu7x:2x2x1
jax: 0.10.0
libtpu: 0.0.40
codegen_flags: <defaults>
</compile_context>

<pallas_src>
import jax
import jax.numpy as jnp
from jax.experimental import pallas as pl
from jax.experimental.pallas import tpu as pltpu


def _round_up(x, m):
    return -(-x // m) * m


def _lm_nll_kernel(ids_ref, mask_ref, embT_ref, biasT_ref, woutT_ref, wout_ref,
                   wnll_ref):
    """One token-tile of the fused decoder + masked NLL.

    ids_ref   : (3, Tn) int32  rows = [input ids, target ids, batch-row ids]
    mask_ref  : (1, Tn) f32    masks[:, 1:] flattened (0 on padded tokens)
    embT_ref  : (H, V)         embedding table, transposed (resident)
    biasT_ref : (H, Bp) f32    per-batch-row fc/att projection, transposed
    woutT_ref : (V, H)         output projection, transposed (resident)
    wout_ref  : (H, V)         output projection (resident, target-col gather)
    wnll_ref  : (1, Tn) f32    per-token  -log p(target) * mask
    """
    f32 = jnp.float32
    mxu_dt = embT_ref.dtype
    vocab = woutT_ref.shape[0]
    b_pad = biasT_ref.shape[1]
    tile_n = mask_ref.shape[-1]

    ids = ids_ref[...]
    ids_in = ids[0:1, :]                                     # (1, Tn)
    ids_tgt = ids[1:2, :]
    row_ids = ids[2:3, :]

    # one-hot encodings (VPU compares); the gathers themselves run on the MXU.
    # NOTE: a target id >= V silently yields tgt_logit = 0 (no bounds check).
    v_iota = jax.lax.broadcasted_iota(jnp.int32, (vocab, tile_n), 0)
    onehot_in = (v_iota == ids_in).astype(mxu_dt)            # (V, Tn)
    onehot_tgt = (v_iota == ids_tgt).astype(mxu_dt)          # (V, Tn)
    b_iota = jax.lax.broadcasted_iota(jnp.int32, (b_pad, tile_n), 0)
    onehot_row = (b_iota == row_ids).astype(f32)             # (Bp, Tn)

    # in-kernel embedding lookup + per-token fc/att bias (one-hot matmuls,
    # f32 accumulate -> single nonzero per column, exact gather)
    emb_t = jnp.dot(embT_ref[...], onehot_in, preferred_element_type=f32)
    bias_t = jnp.dot(biasT_ref[...], onehot_row, preferred_element_type=f32)
    h = jnp.tanh(emb_t + bias_t)                             # (H, Tn) f32

    # vocab logits on the MXU: (V, H) @ (H, Tn) -> (V, Tn), f32 accumulate
    logits = jnp.dot(woutT_ref[...], h.astype(mxu_dt),
                     preferred_element_type=f32)             # (V, Tn)

    # numerically-stable log-sum-exp over the vocab (sublane) axis
    m = jnp.max(logits, axis=0, keepdims=True)               # (1, Tn)
    lse = jnp.log(jnp.sum(jnp.exp(logits - m), axis=0, keepdims=True)) + m

    # target logit: gather W_out[:, tgt] via a one-hot matmul (MXU slot is
    # nearly idle at H=32), then an O(H*Tn) reduce instead of O(V*Tn)
    w_tgt = jnp.dot(wout_ref[...], onehot_tgt, preferred_element_type=f32)
    tgt_logit = jnp.sum(h * w_tgt, axis=0, keepdims=True)    # (1, Tn)

    # per-token weighted NLL; padded / masked positions contribute zero
    wnll_ref[...] = (lse - tgt_logit) * mask_ref[...]


def init_params(key, *, d_fc=32, d_att=32, hidden=32, vocab=128):
    k1, k2, k3, k4 = jax.random.split(key, 4)
    scale = 0.1
    return {
        "embed": scale * jax.random.normal(k1, (vocab, hidden), jnp.float32),
        "w_fc": scale * jax.random.normal(k2, (d_fc, hidden), jnp.float32),
        "w_att": scale * jax.random.normal(k3, (d_att, hidden), jnp.float32),
        "w_out": scale * jax.random.normal(k4, (hidden, vocab), jnp.float32),
    }


def loss_wrapper_forward(params, fc_feats, att_feats, labels, masks, att_masks,
                         gts=None, gt_indices=None, sc_flag=False,
                         mxu_dtype=jnp.bfloat16, tile_n=512):
    """JAX/Pallas equivalent of LossWrapper.forward (sc_flag=False path)."""
    if sc_flag:
        # TODO(synk): self-critical sampling path not implemented.
        raise NotImplementedError("sc_flag=True path is not supported")

    B, T = labels.shape
    Tm = T - 1
    H, V = params["w_out"].shape
    B_pad = _round_up(max(B, 1), 8)

    # ---- glue (plain JAX, cheap / fused by XLA) -----------------------------
    # Hoisted time-invariant projection: ONE (B, H) bias per batch row instead
    # of Tm replicated fc/att features and Tm redundant matmuls.
    att_w = att_masks[..., None].astype(jnp.float32)
    att_ctx = jnp.sum(att_feats * att_w, axis=1) / jnp.maximum(
        jnp.sum(att_w, axis=1), 1.0)                                 # (B, Datt)
    bias = fc_feats @ params["w_fc"] + att_ctx @ params["w_att"]     # (B, H)

    # Token-flattened id / mask streams: 12 B/token of ids + 4 B/token mask
    # instead of an (B, Tm, H) embedding slab (gather/transpose/pad removed).
    N = B * Tm
    ids_in = labels[:, :-1].astype(jnp.int32).reshape(N)
    ids_tgt = labels[:, 1:].astype(jnp.int32).reshape(N)
    row_ids = jnp.repeat(jnp.arange(B, dtype=jnp.int32), Tm)
    mask = masks[:, 1:].astype(jnp.float32).reshape(N)

    tile_n = max(128, _round_up(min(tile_n, _round_up(N, 128)), 128))
    N_pad = _round_up(N, tile_n)
    pad = N_pad - N

    ids = jnp.pad(jnp.stack([ids_in, ids_tgt, row_ids], axis=0),
                  ((0, 0), (0, pad)))                                # (3, N_pad)
    mask_p = jnp.pad(mask, (0, pad)).reshape(1, N_pad)               # (1, N_pad)

    embT = params["embed"].T.astype(mxu_dtype)                       # (H, V)
    woutT = params["w_out"].T.astype(mxu_dtype)                      # (V, H)
    wout = params["w_out"].astype(mxu_dtype)                         # (H, V)
    biasT = jnp.pad(bias.T, ((0, 0), (0, B_pad - B))).astype(jnp.float32)

    # ---- hot path: fused embed + decode + log-softmax + masked NLL ---------
    grid = (N_pad // tile_n,)
    itemsize = jnp.dtype(mxu_dtype).itemsize
    wnll = pl.pallas_call(
        _lm_nll_kernel,
        out_shape=jax.ShapeDtypeStruct((1, N_pad), jnp.float32),
        grid=grid,
        in_specs=[
            pl.BlockSpec((3, tile_n), lambda n: (0, n)),     # packed int ids
            pl.BlockSpec((1, tile_n), lambda n: (0, n)),     # mask
            pl.BlockSpec((H, V), lambda n: (0, 0)),          # embed^T (resident)
            pl.BlockSpec((H, B_pad), lambda n: (0, 0)),      # bias^T  (resident)
            pl.BlockSpec((V, H), lambda n: (0, 0)),          # W_out^T (resident)
            pl.BlockSpec((H, V), lambda n: (0, 0)),          # W_out   (resident)
        ],
        out_specs=pl.BlockSpec((1, tile_n), lambda n: (0, n)),
        compiler_params=pltpu.CompilerParams(
            dimension_semantics=("parallel",),
            vmem_limit_bytes=48 * 1024 * 1024,
        ),
        cost_estimate=pl.CostEstimate(
            flops=2 * N_pad * H * (3 * V + B_pad),
            transcendentals=N_pad * (V + H + 1),
            bytes_accessed=(3 * N_pad * 4            # packed ids
                            + N_pad * 4              # mask
                            + N_pad * 4              # wnll out
                            + 3 * V * H * itemsize   # embT + woutT + wout
                            + H * B_pad * 4),        # biasT
        ),
    )(ids, mask_p, embT, biasT, woutT, wout)

    # Tiny reduction + normalize outside the kernel (per-token partials keep
    # the grid fully parallel).  jnp.maximum guards the all-masked case where
    # the PyTorch criterion would produce NaN (intentional deviation).
    num = jnp.sum(wnll)
    den = jnp.sum(masks[:, 1:].astype(jnp.float32))
    loss = num / jnp.maximum(den, 1.0)
    return {"loss": loss}


def _reference_loss(params, fc_feats, att_feats, labels, masks, att_masks):
    """Pure-JAX reference of the same forward (for correctness check)."""
    emb = jnp.take(params["embed"], labels[:, :-1].astype(jnp.int32), axis=0)
    att_w = att_masks[..., None].astype(jnp.float32)
    att_ctx = jnp.sum(att_feats * att_w, axis=1) / jnp.maximum(
        jnp.sum(att_w, axis=1), 1.0)
    h = jnp.tanh(fc_feats[:, None, :] @ params["w_fc"]
                 + (att_ctx[:, None, :] @ params["w_att"])
                 + emb)
    logits = h @ params["w_out"]
    logp = jax.nn.log_softmax(logits, axis=-1)
    tgt = labels[:, 1:].astype(jnp.int32)
    tgt_lp = jnp.take_along_axis(logp, tgt[..., None], axis=-1)[..., 0]
    mask = masks[:, 1:].astype(jnp.float32)
    return jnp.sum(-tgt_lp * mask) / jnp.sum(mask)


if __name__ == "__main__":
    B, T, Natt = 4, 9, 6
    D_FC, D_ATT, HID, VOCAB = 32, 32, 32, 128

    key = jax.random.PRNGKey(0)
    kp, k1, k2, k3, k4, k5 = jax.random.split(key, 6)

    params = init_params(kp, d_fc=D_FC, d_att=D_ATT, hidden=HID, vocab=VOCAB)

    fc_feats = jax.random.normal(k1, (B, D_FC), jnp.float32)
    att_feats = jax.random.normal(k2, (B, Natt, D_ATT), jnp.float32)

    labels = jax.random.randint(k3, (B, T), 1, VOCAB, dtype=jnp.int32)
    lengths = jax.random.randint(k4, (B,), 5, T + 1, dtype=jnp.int32)
    tpos = jnp.arange(T)[None, :]
    masks = (tpos < lengths[:, None]).astype(jnp.float32)            # (B, T)
    labels = labels * masks.astype(jnp.int32)                        # pad token = 0

    att_lens = jax.random.randint(k5, (B,), 3, Natt + 1, dtype=jnp.int32)
    att_masks = (jnp.arange(Natt)[None, :] < att_lens[:, None]).astype(jnp.float32)

    ref = _reference_loss(params, fc_feats, att_feats, labels, masks, att_masks)

    # f32 MXU path (exact gathers / matmuls): tight tolerance vs reference.
    out_f32 = loss_wrapper_forward(params, fc_feats, att_feats, labels, masks,
                                   att_masks, gts=None, gt_indices=None,
                                   sc_flag=False, mxu_dtype=jnp.float32)
    loss_f32 = jax.block_until_ready(out_f32["loss"])
    assert jnp.allclose(loss_f32, ref, rtol=1e-5, atol=1e-5), (loss_f32, ref)

    # Default bf16 MXU-operand path (all generations; bias/softmax math stays
    # f32, the embedding table itself is bf16-quantized).
    out_bf16 = loss_wrapper_forward(params, fc_feats, att_feats, labels, masks,
                                    att_masks)
    loss_bf16 = jax.block_until_ready(out_bf16["loss"])
    assert jnp.allclose(loss_bf16, ref, rtol=3e-2, atol=3e-2), (loss_bf16, ref)

    print("KERNEL_OK")
</pallas_src>

<mosaic_0001>
module attributes {stable_mosaic.version = 11 : i64} {
  func.func @_lm_nll_kernel(%arg0: i32, %arg1: memref<3x128xi32, #tpu.memory_space<vmem>>, %arg2: memref<1x128xf32, #tpu.memory_space<vmem>>, %arg3: memref<32x128xf32, #tpu.memory_space<vmem>>, %arg4: memref<32x8xf32, #tpu.memory_space<vmem>>, %arg5: memref<128x32xf32, #tpu.memory_space<vmem>>, %arg6: memref<32x128xf32, #tpu.memory_space<vmem>>, %arg7: memref<1x128xf32, #tpu.memory_space<vmem>>) attributes {dimension_semantics = [#tpu.dimension_semantics<parallel>], iteration_bounds = array<i64: 1>, scalar_prefetch = 0 : i64, scratch_operands = 0 : i64, tpu.core_type = #tpu.core_type<tc>, window_params = [{transform_indices = @transform_0, window_bounds = array<i64: 3, 128>}, {transform_indices = @transform_1, window_bounds = array<i64: 1, 128>}, {pipeline_mode = #tpu.pipeline_mode<synchronous>, transform_indices = @transform_2, window_bounds = array<i64: 32, 128>}, {pipeline_mode = #tpu.pipeline_mode<synchronous>, transform_indices = @transform_3, window_bounds = array<i64: 32, 8>}, {pipeline_mode = #tpu.pipeline_mode<synchronous>, transform_indices = @transform_4, window_bounds = array<i64: 128, 32>}, {pipeline_mode = #tpu.pipeline_mode<synchronous>, transform_indices = @transform_5, window_bounds = array<i64: 32, 128>}, {transform_indices = @transform_6, window_bounds = array<i64: 1, 128>}]} {
    %c0 = arith.constant 0 : index
    %c0_0 = arith.constant 0 : index
    %0 = vector.load %arg1[%c0, %c0_0] : memref<3x128xi32, #tpu.memory_space<vmem>>, vector<3x128xi32>
    %1 = vector.extract_strided_slice %0 {offsets = [0, 0], sizes = [1, 128], strides = [1, 1]} : vector<3x128xi32> to vector<1x128xi32>
    %2 = vector.extract_strided_slice %0 {offsets = [1, 0], sizes = [1, 128], strides = [1, 1]} : vector<3x128xi32> to vector<1x128xi32>
    %3 = vector.extract_strided_slice %0 {offsets = [2, 0], sizes = [1, 128], strides = [1, 1]} : vector<3x128xi32> to vector<1x128xi32>
    %4 = tpu.iota {dimensions = array<i32: 0>} : vector<128x128xi32>
    %5 = vector.broadcast %1 : vector<1x128xi32> to vector<128x128xi32>
    %6 = arith.cmpi eq, %4, %5 : vector<128x128xi32>
    %7 = arith.extui %6 : vector<128x128xi1> to vector<128x128xi32>
    %8 = arith.sitofp %7 : vector<128x128xi32> to vector<128x128xf32>
    %9 = vector.broadcast %2 : vector<1x128xi32> to vector<128x128xi32>
    %10 = arith.cmpi eq, %4, %9 : vector<128x128xi32>
    %11 = arith.extui %10 : vector<128x128xi1> to vector<128x128xi32>
    %12 = arith.sitofp %11 : vector<128x128xi32> to vector<128x128xf32>
    %13 = tpu.iota {dimensions = array<i32: 0>} : vector<8x128xi32>
    %14 = vector.broadcast %3 : vector<1x128xi32> to vector<8x128xi32>
    %15 = arith.cmpi eq, %13, %14 : vector<8x128xi32>
    %16 = arith.extui %15 : vector<8x128xi1> to vector<8x128xi32>
    %17 = arith.sitofp %16 : vector<8x128xi32> to vector<8x128xf32>
    %c0_1 = arith.constant 0 : index
    %c0_2 = arith.constant 0 : index
    %18 = vector.load %arg3[%c0_1, %c0_2] : memref<32x128xf32, #tpu.memory_space<vmem>>, vector<32x128xf32>
    %cst = arith.constant dense<0.000000e+00> : vector<32x128xf32>
    %19 = tpu.matmul %18, %8, %cst {dimension_numbers = #tpu.dot_dimension_numbers<[1], [0], [0], [1], [0, 0, 1, 1], [], []>} : vector<32x128xf32>, vector<128x128xf32>, vector<32x128xf32> -> vector<32x128xf32>
    %c0_3 = arith.constant 0 : index
    %c0_4 = arith.constant 0 : index
    %20 = vector.load %arg4[%c0_3, %c0_4] : memref<32x8xf32, #tpu.memory_space<vmem>>, vector<32x8xf32>
    %cst_5 = arith.constant dense<0.000000e+00> : vector<32x128xf32>
    %21 = tpu.matmul %20, %17, %cst_5 {dimension_numbers = #tpu.dot_dimension_numbers<[1], [0], [0], [1], [0, 0, 1, 1], [], []>} : vector<32x8xf32>, vector<8x128xf32>, vector<32x128xf32> -> vector<32x128xf32>
    %22 = arith.addf %19, %21 : vector<32x128xf32>
    %23 = math.tanh %22 : vector<32x128xf32>
    %c0_6 = arith.constant 0 : index
    %c0_7 = arith.constant 0 : index
    %24 = vector.load %arg5[%c0_6, %c0_7] : memref<128x32xf32, #tpu.memory_space<vmem>>, vector<128x32xf32>
    %cst_8 = arith.constant dense<0.000000e+00> : vector<128x128xf32>
    %25 = tpu.matmul %24, %23, %cst_8 {dimension_numbers = #tpu.dot_dimension_numbers<[1], [0], [0], [1], [0, 0, 1, 1], [], []>} : vector<128x32xf32>, vector<32x128xf32>, vector<128x128xf32> -> vector<128x128xf32>
    %cst_9 = arith.constant dense<0xFF800000> : vector<128xf32>
    %26 = vector.multi_reduction <maximumf>, %25, %cst_9 [0] : vector<128x128xf32> to vector<128xf32>
    %27 = vector.shape_cast %26 : vector<128xf32> to vector<1x128xf32>
    %28 = vector.broadcast %27 : vector<1x128xf32> to vector<128x128xf32>
    %29 = arith.subf %25, %28 : vector<128x128xf32>
    %30 = math.exp %29 : vector<128x128xf32>
    %cst_10 = arith.constant dense<0.000000e+00> : vector<128xf32>
    %31 = vector.multi_reduction <add>, %30, %cst_10 [0] : vector<128x128xf32> to vector<128xf32>
    %32 = vector.shape_cast %31 : vector<128xf32> to vector<1x128xf32>
    %33 = math.log %32 : vector<1x128xf32>
    %34 = arith.addf %33, %27 : vector<1x128xf32>
    %c0_11 = arith.constant 0 : index
    %c0_12 = arith.constant 0 : index
    %35 = vector.load %arg6[%c0_11, %c0_12] : memref<32x128xf32, #tpu.memory_space<vmem>>, vector<32x128xf32>
    %cst_13 = arith.constant dense<0.000000e+00> : vector<32x128xf32>
    %36 = tpu.matmul %35, %12, %cst_13 {dimension_numbers = #tpu.dot_dimension_numbers<[1], [0], [0], [1], [0, 0, 1, 1], [], []>} : vector<32x128xf32>, vector<128x128xf32>, vector<32x128xf32> -> vector<32x128xf32>
    %37 = arith.mulf %23, %36 : vector<32x128xf32>
    %cst_14 = arith.constant dense<0.000000e+00> : vector<128xf32>
    %38 = vector.multi_reduction <add>, %37, %cst_14 [0] : vector<32x128xf32> to vector<128xf32>
    %39 = vector.shape_cast %38 : vector<128xf32> to vector<1x128xf32>
    %40 = arith.subf %34, %39 : vector<1x128xf32>
    %c0_15 = arith.constant 0 : index
    %c0_16 = arith.constant 0 : index
    %41 = vector.load %arg2[%c0_15, %c0_16] : memref<1x128xf32, #tpu.memory_space<vmem>>, vector<1x128xf32>
    %42 = arith.mulf %40, %41 : vector<1x128xf32>
    %c0_17 = arith.constant 0 : index
    %c0_18 = arith.constant 0 : index
    %43 = vector.load %arg7[%c0_17, %c0_18] : memref<1x128xf32, #tpu.memory_space<vmem>>, vector<1x128xf32>
    tpu.vector_store %arg7[%c0_17, %c0_18], %42 {strides = array<i32>} : memref<1x128xf32, #tpu.memory_space<vmem>>, vector<1x128xf32>,
    return
  }
  func.func @transform_0(%arg0: i32) -> (i32, i32) {
    %c0_i32 = arith.constant 0 : i32
    %c0_i32_0 = arith.constant 0 : i32
    return %c0_i32, %arg0 : i32, i32
  }
  func.func @transform_1(%arg0: i32) -> (i32, i32) {
    %c0_i32 = arith.constant 0 : i32
    %c0_i32_0 = arith.constant 0 : i32
    return %c0_i32, %arg0 : i32, i32
  }
  func.func @transform_2(%arg0: i32) -> (i32, i32) {
    %c0_i32 = arith.constant 0 : i32
    %c0_i32_0 = arith.constant 0 : i32
    %c0_i32_1 = arith.constant 0 : i32
    return %c0_i32, %c0_i32_0 : i32, i32
  }
  func.func @transform_3(%arg0: i32) -> (i32, i32) {
    %c0_i32 = arith.constant 0 : i32
    %c0_i32_0 = arith.constant 0 : i32
    %c0_i32_1 = arith.constant 0 : i32
    return %c0_i32, %c0_i32_0 : i32, i32
  }
  func.func @transform_4(%arg0: i32) -> (i32, i32) {
    %c0_i32 = arith.constant 0 : i32
    %c0_i32_0 = arith.constant 0 : i32
    %c0_i32_1 = arith.constant 0 : i32
    return %c0_i32, %c0_i32_0 : i32, i32
  }
  func.func @transform_5(%arg0: i32) -> (i32, i32) {
    %c0_i32 = arith.constant 0 : i32
    %c0_i32_0 = arith.constant 0 : i32
    %c0_i32_1 = arith.constant 0 : i32
    return %c0_i32, %c0_i32_0 : i32, i32
  }
  func.func @transform_6(%arg0: i32) -> (i32, i32) {
    %c0_i32 = arith.constant 0 : i32
    %c0_i32_0 = arith.constant 0 : i32
    return %c0_i32, %arg0 : i32, i32
  }
}

</mosaic_0001>

<bundles_post_ra>
// kernel: tpu_custom_call.1
= control target key start
LH: loop header
LB: loop body
LE: loop exit
PB: predicated region body
PF: predicated region fallthrough
CT: control target
= control target key end

     0   :  { %v25_v0 = vlaneseq  ;;  %vm161_vm0 = vcmask 64512   ;;  %s1578_s0 = inlined_call_operand.vmem [shape: s32[3,128], index: 0, kind: input, shape index: {}]   ;;  %s1579_s1 = inlined_call_operand.vmem [shape: f32[1,128], index: 1, kind: input, shape index: {}]   ;;  %s1580_s2 = inlined_call_operand.vmem [shape: f32[32,128], index: 2, kind: input, shape index: {}]   ;;  %s1581_s3 = inlined_call_operand.vmem [shape: f32[32,8], index: 3, kind: input, shape index: {}]   ;;  %s1582_s4 = inlined_call_operand.vmem [shape: f32[128,32], index: 4, kind: input, shape index: {}]   ;;  %s1583_s5 = inlined_call_operand.vmem [shape: f32[32,128], index: 5, kind: input, shape index: {}]   ;;  %s1584_s6 = inlined_call_operand.hbm [shape: f32[1,128], index: 6, kind: output, shape index: {}]  }
   0x1   :  { %v157_v1 = vld [vmem:[%s1581_s3] sm:$0xff] }
   0x2   :  { %924 = vmatprep.mubr.msk.f32.mxu0 %vm161_vm0, %v157_v1  ;;  %v1225_v2 = vshrl.u32 %v25_v0, 7  ;;  %v1230_v3 = vld [vmem:[%s1578_s0] sm:$0x7] }
   0x3   :  { %11 = vsyncpa [#allocation3], 0  ;;  %v158_v13 = vld [vmem:[%s1581_s3 + $0x8] sm:$0xff]  ;;  %v1183_v14 = vmov 1.0   ;;  %v159_v15 = vld [vmem:[%s1581_s3 + $0x10] sm:$0xff]  ;;  %s1185_s0 = smov [#allocation2]  }
   0x4   :  { %v44_v4 = vsub.s32 0, %v1225_v2  ;;  %v148_v5 = vsub.s32 2, %v1225_v2  ;;  %v1235_v6 = vadd.s32 8, %v1225_v2  ;;  %v1238_v7 = vadd.s32 16, %v1225_v2  ;;  %v160_v20 = vld [vmem:[%s1581_s3 + $0x18] sm:$0xff]  ;;  %v153_v21 = vld [vmem:[%s1580_s2] sm:$0xff] }
   0x5   :  { %v1241_v8 = vadd.s32 24, %v1225_v2  ;;  %v1248_v11 = vadd.s32 32, %v1225_v2  ;;  %v1251_v12 = vadd.s32 40, %v1225_v2  ;;  %v1184_v17 = vmov 1.0|1.0   ;;  %v154_v30 = vld [vmem:[%s1580_s2 + $0x8] sm:$0xff] }
   0x6   :  { %v1244_v9 = vrot.slane %v1230_v3, %v44_v4  ;;  %v149_v10 = vrot.slane %v1230_v3, %v148_v5  ;;  %v1279_v18 = vadd.s32 48, %v1225_v2  ;;  %v1282_v19 = vadd.s32 56, %v1225_v2  ;;  %v155_v31 = vld [vmem:[%s1580_s2 + $0x10] sm:$0xff]  ;;  %v156_v32 = vld [vmem:[%s1580_s2 + $0x18] sm:$0xff]  ;;  %v348_v33 = vld [vmem:[%s1582_s4] sm:$0xff]  ;;  %s763_s25 = sshll.u32 %s1185_s0, 4  ;;  %s764_s25 = int_to_ptr.vmem [resolvable:$true] %s763_s25 }
   0x7   :  { %v1300_v22 = vadd.s32 64, %v1225_v2  ;;  %v1303_v23 = vadd.s32 72, %v1225_v2  ;;  %v1315_v24 = vadd.s32 80, %v1225_v2  ;;  %v1318_v25 = vadd.s32 88, %v1225_v2  ;;  %v349_v46 = vld [vmem:[%s1582_s4 + $0x8] sm:$0xff]  ;;  %v350_v47 = vld [vmem:[%s1582_s4 + $0x10] sm:$0xff]  ;;  %p1164_p1 = scmp.lt.s32.totalorder %s764_s25, %s764_s25 }
   0x8   :  { %vm150_vm1 = vcmp.eq.s32.totalorder %v1225_v2, %v149_v10  ;;  %vm46_vm2 = vcmp.eq.s32.totalorder %v1225_v2, %v1244_v9  ;;  %vm47_vm3 = vcmp.eq.s32.totalorder %v1235_v6, %v1244_v9  ;;  %vm48_vm4 = vcmp.eq.s32.totalorder %v1238_v7, %v1244_v9  ;;  %v351_v48 = vld [vmem:[%s1582_s4 + $0x18] sm:$0xff]  ;;  %v352_v49 = vld [vmem:[%s1582_s4 + $0x20] sm:$0xff]  ;;  %v353_v50 = vld [vmem:[%s1582_s4 + $0x28] sm:$0xff]  ;;  %s1159_s26 = scalar_lea.vmem %s764_s25, 16  ;;  %s1163_s27 = scalar_lea.vmem %s764_s25, 32 }
   0x9   :  { %922 = vmatprep.subr.msk.mxu0 %vm150_vm1, %v1183_v14  ;;  %vm1038_vm5 = vmpackc.low %vm47_vm3, %vm46_vm2  ;;  %vm49_vm6 = vcmp.eq.s32.totalorder %v1241_v8, %v1244_v9  ;;  %vm50_vm8 = vcmp.eq.s32.totalorder %v1248_v11, %v1244_v9  ;;  %vm51_vm9 = vcmp.eq.s32.totalorder %v1251_v12, %v1244_v9  ;;  %vm52_vm11 = vcmp.eq.s32.totalorder %v1279_v18, %v1244_v9  ;;  %v354_v51 = vld [vmem:[%s1582_s4 + $0x30] sm:$0xff]  ;;  %v355_v52 = vld [vmem:[%s1582_s4 + $0x38] sm:$0xff]  ;;  %p1160_p0 = scmp.ne.s32.totalorder %s764_s25, %s1159_s26  ;;  %p1165_p2 = scmp.lt.s32.totalorder %s1163_s27, %s1159_s26 }
   0xa   :  { %923 = vmatpush3.msk.msra.mxu0 %vm150_vm1, %v1183_v14  ;;  %vm1268_vm7 = vmpackc.low %vm49_vm6, %vm48_vm4  ;;  %vm53_vm12 = vcmp.eq.s32.totalorder %v1282_v19, %v1244_v9  ;;  %vm54_vm14 = vcmp.eq.s32.totalorder %v1300_v22, %v1244_v9  ;;  %vm55_vm15 = vcmp.eq.s32.totalorder %v1303_v23, %v1244_v9  ;;  %vm56_vm1 = vcmp.eq.s32.totalorder %v1315_v24, %v1244_v9  ;;  %v356_v53 = vld [vmem:[%s1582_s4 + $0x40] sm:$0xff]  ;;  %v357_v54 = vld [vmem:[%s1582_s4 + $0x48] sm:$0xff] }
   0xb   :  { %1039 = vmatprep.subr.msk.bf16.mxu0 %vm1038_vm5, %v1184_v17  ;;  %925 = vmatmul.mubr.msk.f32.vlgmr.msra.gmra.mrb[0].mxu0 %vm161_vm0, %v158_v13  ;;  %vm1046_vm10 = vmpackc.low %vm51_vm9, %vm50_vm8  ;;  %vm57_vm2 = vcmp.eq.s32.totalorder %v1318_v25, %v1244_v9  ;;  %v1327_v26 = vadd.s32 96, %v1225_v2  ;;  %v1330_v27 = vadd.s32 104, %v1225_v2  ;;  %v1339_v28 = vadd.s32 112, %v1225_v2  ;;  %v358_v55 = vld [vmem:[%s1582_s4 + $0x50] sm:$0xff]  ;;  %v359_v56 = vld [vmem:[%s1582_s4 + $0x58] sm:$0xff]  ;;  %p1166_p3 = por %p1165_p2, %p1164_p1 }
   0xc   :  { %1041 = vmatpush3.bf16.msk.msra.mxu0 %vm1038_vm5, %v1184_v17  ;;  %927 = vmatprep.mubr.msk.f32.mxu0 %vm161_vm0, %v159_v15  ;;  %vm1050_vm13 = vmpackc.low %vm53_vm12, %vm52_vm11  ;;  %v1342_v29 = vadd.s32 120, %v1225_v2  ;;  %v96_v38 = vsub.s32 1, %v1225_v2  ;;  %v360_v57 = vld [vmem:[%s1582_s4 + $0x60] sm:$0xff]  ;;  %v361_v58 = vld [vmem:[%s1582_s4 + $0x68] sm:$0xff] }
   0xd   :  { %1043 = vmatprep.subr.msk.bf16.mxu0 %vm1268_vm7, %v1184_v17  ;;  %vm1058_vm3 = vmpackc.low %vm57_vm2, %vm56_vm1  ;;  %vm58_vm4 = vcmp.eq.s32.totalorder %v1327_v26, %v1244_v9  ;;  %vm59_vm5 = vcmp.eq.s32.totalorder %v1330_v27, %v1244_v9  ;;  %v362_v59 = vld [vmem:[%s1582_s4 + $0x70] sm:$0xff]  ;;  %v363_v60 = vld [vmem:[%s1582_s4 + $0x78] sm:$0xff]  ;;  %p1167_p4 = pnand %p1166_p3, %p1160_p0 }
   0xe   :  { %vm1062_vm6 = vmpackc.low %vm59_vm5, %vm58_vm4  ;;  %vm61_vm8 = vcmp.eq.s32.totalorder %v1342_v29, %v1244_v9  ;;  %v1372_v40 = vrot.slane %v1230_v3, %v96_v38  ;;  %v651_v61 = vld [vmem:[%s1583_s5] sm:$0xff]  ;;  %v652_v62 = vld [vmem:[%s1583_s5 + $0x8] sm:$0xff] }
   0xf   :  { %928 = vmatmul.mubr.msk.f32.gmra.mrb[2].mxu0 %vm161_vm0, %v160_v20  ;;  %vm1054_vm0 = vmpackc.low %vm55_vm15, %vm54_vm14  ;;  %v653_v63 = vld [vmem:[%s1583_s5 + $0x10] sm:$0xff]  ;;  %v654_v0 = vld [vmem:[%s1583_s5 + $0x18] sm:$0xff] }
  0x10   :  { %1045 = vmatpush3.bf16.msk.msra.mxu0 %vm1268_vm7, %v1184_v17  ;;  %962 = vmatprep.mubr.f32.mxu0 %v153_v21  ;;  %vm60_vm7 = vcmp.eq.s32.totalorder %v1339_v28, %v1244_v9  ;;  %vm98_vm11 = vcmp.eq.s32.totalorder %v1225_v2, %v1372_v40  ;;  %vm99_vm12 = vcmp.eq.s32.totalorder %v1235_v6, %v1372_v40 }
  0x11   :  { %1047 = vmatprep.subr.msk.bf16.mxu0 %vm1046_vm10, %v1184_v17  ;;  %vm1066_vm9 = vmpackc.low %vm61_vm8, %vm60_vm7  ;;  %vm100_vm14 = vcmp.eq.s32.totalorder %v1238_v7, %v1372_v40  ;;  %vm101_vm15 = vcmp.eq.s32.totalorder %v1241_v8, %v1372_v40  ;;  %vm102_vm1 = vcmp.eq.s32.totalorder %v1248_v11, %v1372_v40  ;;  %vm103_vm2 = vcmp.eq.s32.totalorder %v1251_v12, %v1372_v40 }
  0x12   :  { %vm104_vm4 = vcmp.eq.s32.totalorder %v1279_v18, %v1372_v40  ;;  %vm105_vm5 = vcmp.eq.s32.totalorder %v1282_v19, %v1372_v40  ;;  %vm106_vm7 = vcmp.eq.s32.totalorder %v1300_v22, %v1372_v40  ;;  %vm107_vm8 = vcmp.eq.s32.totalorder %v1303_v23, %v1372_v40 }
  0x14   :  { %1049 = vmatpush3.bf16.msk.msra.mxu0 %vm1046_vm10, %v1184_v17  ;;  %vm364_vm10 = vcmask 261120  }
  0x15   :  { %1051 = vmatprep.subr.msk.bf16.mxu0 %vm1050_vm13, %v1184_v17  ;;  %976 = vmatprep.mubr.msk.f32.mxu1 %vm364_vm10, %v348_v33 }
  0x18   :  { %1053 = vmatpush3.bf16.msk.msra.mxu0 %vm1050_vm13, %v1184_v17  ;;  %vm1078_vm13 = vmpackc.low %vm99_vm12, %vm98_vm11  ;;  %vm108_vm11 = vcmp.eq.s32.totalorder %v1315_v24, %v1372_v40  ;;  %vm109_vm12 = vcmp.eq.s32.totalorder %v1318_v25, %v1372_v40 }
  0x19   :  { %1055 = vmatprep.subr.msk.bf16.mxu0 %vm1054_vm0, %v1184_v17 }
  0x1c   :  { %1057 = vmatpush3.bf16.msk.msra.mxu0 %vm1054_vm0, %v1184_v17  ;;  %vm1082_vm0 = vmpackc.low %vm101_vm15, %vm100_vm14  ;;  %vm110_vm14 = vcmp.eq.s32.totalorder %v1327_v26, %v1372_v40  ;;  %vm111_vm15 = vcmp.eq.s32.totalorder %v1330_v27, %v1372_v40 }
  0x1d   :  { %1059 = vmatprep.subr.msk.bf16.mxu0 %vm1058_vm3, %v1184_v17 }
  0x20   :  { %1061 = vmatpush3.bf16.msk.msra.mxu0 %vm1058_vm3, %v1184_v17  ;;  %vm1086_vm3 = vmpackc.low %vm103_vm2, %vm102_vm1  ;;  %vm112_vm1 = vcmp.eq.s32.totalorder %v1339_v28, %v1372_v40  ;;  %vm113_vm2 = vcmp.eq.s32.totalorder %v1342_v29, %v1372_v40 }
  0x21   :  { %1063 = vmatprep.subr.msk.bf16.mxu0 %vm1062_vm6, %v1184_v17 }
  0x24   :  { %1065 = vmatpush3.bf16.msk.msra.mxu0 %vm1062_vm6, %v1184_v17  ;;  %vm1090_vm6 = vmpackc.low %vm105_vm5, %vm104_vm4 }
  0x25   :  { %1067 = vmatprep.subr.msk.bf16.mxu0 %vm1066_vm9, %v1184_v17 }
  0x28   :  { %1069 = vmatpush3.bf16.msk.msra.mxu0 %vm1066_vm9, %v1184_v17  ;;  %vm1094_vm9 = vmpackc.low %vm107_vm8, %vm106_vm7 }
  0x2b   :  { %963 = vmatmul.mubr.f32.vlgmr.msra.gmra.mrb[0].mxu0 %v154_v30 }
  0x2c   :  { %965 = vmatprep.mubr.f32.mxu0 %v155_v31 }
  0x2f   :  { %966 = vmatmul.mubr.f32.gmra.mrb[2].mxu0 %v156_v32 }
  0xfe   :  { %v964_v34 = vpop.f32.mrb[0].mxu0 }
  0xff   :  { %1117 = vtanh.f32 %v964_v34  ;;  %v325_v35 = vpop.f32.mrb[1].mxu0 }
 0x100   :  { %1119 = vtanh.f32 %v325_v35 }
 0x102   :  { %v967_v36 = vpop.f32.mrb[2].mxu0 }
 0x103   :  { %1121 = vtanh.f32 %v967_v36  ;;  %v335_v37 = vpop.f32.mrb[3].mxu0 }
 0x104   :  { %1123 = vtanh.f32 %v335_v37 }
 0x109   :  { %v1369_v39 = vpop.eup %1117 }
 0x10a   :  { %v1374_v41 = vpop.eup %1119 }
 0x10b   :  { %v1070_v42 = vpack.c.bf16 %v1369_v39, %v1374_v41 }
 0x10d   :  { %v1378_v43 = vpop.eup %1121  ;;  %1071 = vmatprep.subr.bf16.mxu1 %v1070_v42 }
 0x10e   :  { %v1384_v44 = vpop.eup %1123  ;;  %1073 = vmatpush3.bf16.msra.mxu1 %v1070_v42 }
 0x10f   :  { %v1074_v45 = vpack.c.bf16 %v1378_v43, %v1384_v44 }
 0x111   :  { %1075 = vmatprep.subr.bf16.mxu1 %v1074_v45 }
 0x112   :  { %1077 = vmatpush3.bf16.msra.mxu1 %v1074_v45 }
 0x113   :  { %1079 = vmatprep.subr.msk.bf16.mxu1 %vm1078_vm13, %v1184_v17 }
 0x115   :  { %977 = vmatmul.mubr.msk.f32.vlgmr.msra.gmra.mrb[0].mxu1 %vm364_vm10, %v349_v46 }
 0x116   :  { %1081 = vmatpush3.bf16.msk.msra.mxu1 %vm1078_vm13, %v1184_v17  ;;  %979 = vmatprep.mubr.msk.f32.mxu1 %vm364_vm10, %v350_v47  ;;  %vm1098_vm13 = vmpackc.low %vm109_vm12, %vm108_vm11 }
 0x117   :  { %1083 = vmatprep.subr.msk.bf16.mxu1 %vm1082_vm0, %v1184_v17 }
 0x119   :  { %980 = vmatmul.mubr.msk.f32.gmra.mrb[2].mxu1 %vm364_vm10, %v351_v48 }
 0x11a   :  { %1085 = vmatpush3.bf16.msk.msra.mxu1 %vm1082_vm0, %v1184_v17  ;;  %982 = vmatprep.mubr.msk.f32.mxu1 %vm364_vm10, %v352_v49  ;;  %vm1102_vm0 = vmpackc.low %vm111_vm15, %vm110_vm14 }
 0x11b   :  { %1087 = vmatprep.subr.msk.bf16.mxu1 %vm1086_vm3, %v1184_v17 }
 0x11d   :  { %983 = vmatmul.mubr.msk.f32.gmra.mrb[4].mxu1 %vm364_vm10, %v353_v50 }
 0x11e   :  { %1089 = vmatpush3.bf16.msk.msra.mxu1 %vm1086_vm3, %v1184_v17  ;;  %985 = vmatprep.mubr.msk.f32.mxu1 %vm364_vm10, %v354_v51  ;;  %vm1106_vm3 = vmpackc.low %vm113_vm2, %vm112_vm1 }
 0x11f   :  { %1091 = vmatprep.subr.msk.bf16.mxu1 %vm1090_vm6, %v1184_v17 }
 0x121   :  { %986 = vmatmul.mubr.msk.f32.gmra.mrb[6].mxu1 %vm364_vm10, %v355_v52 }
 0x122   :  { %1093 = vmatpush3.bf16.msk.msra.mxu1 %vm1090_vm6, %v1184_v17  ;;  %988 = vmatprep.mubr.msk.f32.mxu1 %vm364_vm10, %v356_v53 }
 0x123   :  { %1095 = vmatprep.subr.msk.bf16.mxu1 %vm1094_vm9, %v1184_v17 }
 0x125   :  { %989 = vmatmul.mubr.msk.f32.gmra.mrb[8].mxu1 %vm364_vm10, %v357_v54 }
 0x126   :  { %1097 = vmatpush3.bf16.msk.msra.mxu1 %vm1094_vm9, %v1184_v17  ;;  %991 = vmatprep.mubr.msk.f32.mxu1 %vm364_vm10, %v358_v55 }
 0x127   :  { %1099 = vmatprep.subr.msk.bf16.mxu1 %vm1098_vm13, %v1184_v17 }
 0x129   :  { %992 = vmatmul.mubr.msk.f32.gmra.mrb[10].mxu1 %vm364_vm10, %v359_v56 }
 0x12a   :  { %1101 = vmatpush3.bf16.msk.msra.mxu1 %vm1098_vm13, %v1184_v17  ;;  %994 = vmatprep.mubr.msk.f32.mxu1 %vm364_vm10, %v360_v57 }
 0x12b   :  { %1103 = vmatprep.subr.msk.bf16.mxu1 %vm1102_vm0, %v1184_v17 }
 0x12d   :  { %995 = vmatmul.mubr.msk.f32.gmra.mrb[12].mxu1 %vm364_vm10, %v361_v58 }
 0x12e   :  { %1105 = vmatpush3.bf16.msk.msra.mxu1 %vm1102_vm0, %v1184_v17  ;;  %997 = vmatprep.mubr.msk.f32.mxu1 %vm364_vm10, %v362_v59 }
 0x12f   :  { %1107 = vmatprep.subr.msk.bf16.mxu1 %vm1106_vm3, %v1184_v17 }
 0x131   :  { %998 = vmatmul.mubr.msk.f32.gmra.mrb[14].mxu1 %vm364_vm10, %v363_v60 }
 0x132   :  { %1109 = vmatpush3.bf16.msk.msra.mxu1 %vm1106_vm3, %v1184_v17  ;;  %1032 = vmatprep.mubr.f32.mxu1 %v651_v61 }
 0x135   :  { %1033 = vmatmul.mubr.f32.vlgmr.msra.gmra.mrb[16].mxu1 %v652_v62 }
 0x136   :  { %1035 = vmatprep.mubr.f32.mxu1 %v653_v63 }
 0x139   :  { %1036 = vmatmul.mubr.f32.gmra.mrb[18].mxu1 %v654_v0 }
 0x1e8   :  { %v978_v1 = vpop.f32.mrb[0].mxu1 }
 0x1e9   :  { %v479_v2 = vpop.f32.mrb[1].mxu1 }
 0x1ec   :  { %v981_v3 = vpop.f32.mrb[2].mxu1 }
 0x1ed   :  { %v489_v4 = vpop.f32.mrb[3].mxu1 }
 0x1f0   :  { %v984_v5 = vpop.f32.mrb[4].mxu1 }
 0x1f1   :  { %v559_v6 = vmax.f32 %v978_v1, %v984_v5  ;;  %v499_v7 = vpop.f32.mrb[5].mxu1 }
 0x1f2   :  { %v558_v8 = vmax.f32 %v479_v2, %v499_v7 }
 0x1f4   :  { %v1504_v9 = vpop.f32.mrb[6].mxu1 }
 0x1f5   :  { %v561_v10 = vmax.f32 %v981_v3, %v1504_v9  ;;  %v509_v11 = vpop.f32.mrb[7].mxu1 }
 0x1f6   :  { %v560_v12 = vmax.f32 %v489_v4, %v509_v11 }
 0x1f8   :  { %v1507_v13 = vpop.f32.mrb[8].mxu1 }
 0x1f9   :  { %v563_v14 = vmax.f32 %v559_v6, %v1507_v13  ;;  %v519_v15 = vpop.f32.mrb[9].mxu1 }
 0x1fa   :  { %v562_v16 = vmax.f32 %v558_v8, %v519_v15 }
 0x1fc   :  { %v1510_v17 = vpop.f32.mrb[10].mxu1 }
 0x1fd   :  { %v565_v18 = vmax.f32 %v561_v10, %v1510_v17  ;;  %v1513_v19 = vpop.f32.mrb[11].mxu1 }
 0x1fe   :  { %v564_v20 = vmax.f32 %v560_v12, %v1513_v19 }
 0x200   :  { %v1516_v21 = vpop.f32.mrb[12].mxu1 }
 0x201   :  { %v567_v22 = vmax.f32 %v563_v14, %v1516_v21  ;;  %v1519_v23 = vpop.f32.mrb[13].mxu1 }
 0x202   :  { %v566_v24 = vmax.f32 %v562_v16, %v1519_v23 }
 0x204   :  { %v570_v25 = vmax.f32 %v566_v24, %v567_v22  ;;  %v1522_v26 = vpop.f32.mrb[14].mxu1 }
 0x205   :  { %v569_v27 = vmax.f32 %v565_v18, %v1522_v26  ;;  %v1525_v28 = vpop.f32.mrb[15].mxu1 }
 0x206   :  { %v568_v29 = vmax.f32 %v564_v20, %v1525_v28 }
 0x208   :  { %v571_v30 = vmax.f32 %v568_v29, %v569_v27  ;;  %v1034_v31 = vpop.f32.mrb[16].mxu1 }
 0x209   :  { %v741_v32 = vmul.f32 %v1369_v39, %v1034_v31  ;;  %v721_v33 = vpop.f32.mrb[17].mxu1 }
 0x20a   :  { %v572_v34 = vmax.f32 %v570_v25, %v571_v30  ;;  %v740_v35 = vmul.f32 %v1374_v41, %v721_v33 }
 0x20c   :  { %v573_v36 = vrot.slane %v572_v34, 4  ;;  %v744_v37 = vadd.f32 %v741_v32, %v740_v35  ;;  %v1037_v38 = vpop.f32.mrb[18].mxu1 }
 0x20d   :  { %v731_v40 = vpop.f32.mrb[19].mxu1  ;;  %v743_v47 = vmul.f32 %v1378_v43, %v1037_v38 }
 0x20e   :  { %v574_v42 = vmax.f32 %v572_v34, %v573_v36  ;;  %v742_v45 = vmul.f32 %v1384_v44, %v731_v40 }
 0x210   :  { %v575_v46 = vrot.slane %v574_v42, 2  ;;  %v745_v48 = vadd.f32 %v744_v37, %v742_v45 }
 0x212   :  { %v576_v49 = vmax.f32 %v574_v42, %v575_v46  ;;  %v1532_v50 = vadd.f32 %v745_v48, %v743_v47 }
 0x214   :  { %v577_v51 = vrot.slane %v576_v49, 1 }
 0x216   :  { %v1534_v39 = vmax.f32 %v576_v49, %v577_v51 }
 0x218   :  { %v579_v52 = vsub.f32 %v479_v2, %v1534_v39  ;;  %v580_v41 = vsub.f32 %v978_v1, %v1534_v39  ;;  %v581_v53 = vsub.f32 %v489_v4, %v1534_v39  ;;  %v582_v54 = vsub.f32 %v981_v3, %v1534_v39 }
 0x219   :  { %v583_v56 = vsub.f32 %v499_v7, %v1534_v39  ;;  %v584_v57 = vsub.f32 %v984_v5, %v1534_v39  ;;  %v585_v59 = vsub.f32 %v509_v11, %v1534_v39  ;;  %v586_v61 = vsub.f32 %v1504_v9, %v1534_v39 }
 0x21a   :  { %v595_v55 = vmul.f32 1.442695, %v579_v52  ;;  %v597_v44 = vmul.f32 1.442695, %v580_v41  ;;  %v599_v43 = vmul.f32 1.442695, %v581_v53  ;;  %v587_v63 = vsub.f32 %v519_v15, %v1534_v39 }
 0x21b   :  { %v601_v58 = vmul.f32 1.442695, %v582_v54  ;;  %v603_v60 = vmul.f32 1.442695, %v583_v56  ;;  %v605_v62 = vmul.f32 1.442695, %v584_v57  ;;  %v588_v1 = vsub.f32 %v1507_v13, %v1534_v39 }
 0x21c   :  { %1125 = vpow2.f32 %v595_v55  ;;  %v607_v0 = vmul.f32 1.442695, %v585_v59  ;;  %v609_v2 = vmul.f32 1.442695, %v586_v61  ;;  %v589_v5 = vsub.f32 %v1513_v19, %v1534_v39 }
 0x21d   :  { %1127 = vpow2.f32 %v597_v44  ;;  %v611_v6 = vmul.f32 1.442695, %v587_v63  ;;  %v590_v9 = vsub.f32 %v1510_v17, %v1534_v39  ;;  %v613_v10 = vmul.f32 1.442695, %v588_v1  ;;  %v754_v1 = vld [vmem:[%s1579_s1] sm:$0x1] }
 0x21e   :  { %1129 = vpow2.f32 %v599_v43  ;;  %v591_v13 = vsub.f32 %v1519_v23, %v1534_v39  ;;  %v615_v14 = vmul.f32 1.442695, %v589_v5  ;;  %v592_v18 = vsub.f32 %v1516_v21, %v1534_v39 }
 0x21f   :  { %1131 = vpow2.f32 %v601_v58  ;;  %v617_v19 = vmul.f32 1.442695, %v590_v9  ;;  %v593_v17 = vsub.f32 %v1525_v28, %v1534_v39  ;;  %v594_v23 = vsub.f32 %v1522_v26, %v1534_v39 }
 0x220   :  { %1133 = vpow2.f32 %v603_v60  ;;  %v619_v24 = vmul.f32 1.442695, %v591_v13  ;;  %v621_v29 = vmul.f32 1.442695, %v592_v18  ;;  %v747_v55 = vrot.slane %v1532_v50, 4 }
 0x221   :  { %1135 = vpow2.f32 %v605_v62  ;;  %v623_v21 = vmul.f32 1.442695, %v593_v17  ;;  %v625_v34 = vmul.f32 1.442695, %v594_v23 }
 0x222   :  { %1137 = vpow2.f32 %v607_v0  ;;  %v748_v43 = vadd.f32 %v747_v55, %v1532_v50 }
 0x223   :  { %1139 = vpow2.f32 %v609_v2 }
 0x224   :  { %1141 = vpow2.f32 %v611_v6  ;;  %v749_v58 = vrot.slane %v748_v43, 2 }
 0x225   :  { %1143 = vpow2.f32 %v613_v10 }
 0x226   :  { %v1126_v3 = vpop.eup %1125  ;;  %1145 = vpow2.f32 %v615_v14  ;;  %v750_v59 = vadd.f32 %v749_v58, %v748_v43 }
 0x227   :  { %v1128_v4 = vpop.eup %1127  ;;  %1147 = vpow2.f32 %v617_v19 }
 0x228   :  { %v627_v7 = vadd.f32 %v1128_v4, %v1126_v3  ;;  %v1130_v8 = vpop.eup %1129  ;;  %1149 = vpow2.f32 %v619_v24  ;;  %v751_v60 = vrot.slane %v750_v59, 1 }
 0x229   :  { %v1132_v12 = vpop.eup %1131  ;;  %1151 = vpow2.f32 %v621_v29 }
 0x22a   :  { %v628_v11 = vadd.f32 %v1130_v8, %v627_v7  ;;  %v1134_v16 = vpop.eup %1133  ;;  %1153 = vpow2.f32 %v623_v21  ;;  %v752_v0 = vadd.f32 %v751_v60, %v750_v59 }
 0x22b   :  { %v1136_v22 = vpop.eup %1135  ;;  %1155 = vpow2.f32 %v625_v34 }
 0x22c   :  { %v629_v15 = vadd.f32 %v1132_v12, %v628_v11  ;;  %v1138_v27 = vpop.eup %1137 }
 0x22d   :  { %v1140_v31 = vpop.eup %1139 }
 0x22e   :  { %v630_v20 = vadd.f32 %v1134_v16, %v629_v15  ;;  %v1142_v33 = vpop.eup %1141 }
 0x22f   :  { %v1144_v36 = vpop.eup %1143 }
 0x230   :  { %v631_v25 = vadd.f32 %v1136_v22, %v630_v20  ;;  %v1146_v37 = vpop.eup %1145 }
 0x231   :  { %v1148_v40 = vpop.eup %1147 }
 0x232   :  { %v632_v30 = vadd.f32 %v1138_v27, %v631_v25  ;;  %v1150_v26 = vpop.eup %1149 }
 0x233   :  { %v1152_v46 = vpop.eup %1151 }
 0x234   :  { %v633_v32 = vadd.f32 %v1140_v31, %v632_v30  ;;  %v1154_v48 = vpop.eup %1153 }
 0x235   :  { %v1156_v51 = vpop.eup %1155 }
 0x236   :  { %v634_v35 = vadd.f32 %v1142_v33, %v633_v32 }
 0x238   :  { %v635_v28 = vadd.f32 %v1144_v36, %v634_v35 }
 0x23a   :  { %v636_v38 = vadd.f32 %v1146_v37, %v635_v28 }
 0x23c   :  { %v637_v42 = vadd.f32 %v1148_v40, %v636_v38 }
 0x23e   :  { %v638_v45 = vadd.f32 %v1150_v26, %v637_v42 }
 0x240   :  { %v639_v47 = vadd.f32 %v1152_v46, %v638_v45 }
 0x242   :  { %v640_v49 = vadd.f32 %v1154_v48, %v639_v47 }
 0x244   :  { %v641_v52 = vadd.f32 %v1156_v51, %v640_v49 }
 0x246   :  { %v642_v41 = vrot.slane %v641_v52, 4 }
 0x248   :  { %v643_v53 = vadd.f32 %v642_v41, %v641_v52 }
 0x24a   :  { %v644_v54 = vrot.slane %v643_v53, 2 }
 0x24c   :  { %v645_v44 = vadd.f32 %v644_v54, %v643_v53 }
 0x24e   :  { %v646_v56 = vrot.slane %v645_v44, 1 }
 0x250   :  { %v647_v57 = vadd.f32 %v646_v56, %v645_v44 }
 0x252   :  { %1157 = vlog2.f32 %v647_v57 }
 0x25c   :  { %v1158_v61 = vpop.eup %1157 }
 0x25d   :  { %v649_v62 = vmul.f32 0.6931472, %v1158_v61 }
 0x25f   :  { %v650_v63 = vadd.f32 %v649_v62, %v1534_v39 }
 0x261   :  { %v753_v2 = vsub.f32 %v650_v63, %v752_v0 }
 0x263   :  { %v755_v3 = vmul.f32 %v754_v1, %v753_v2 }
 0x265   :  { %756 = vst [vmem:[#allocation2] sm:$0x1] %v755_v3 }
 0x266   :  { %1170 = shalt.err (!%p1167_p4)
}
 0x267   :  { %s1171_s30 = scalar_lea.hbm %s1584_s6, 16 }
 0x268   :  { %p1172_p5 = scmp.ne.s32.totalorder %s1584_s6, %s1171_s30  ;;  %p1175_p6 = scmp.lt.u32.totalorder %s1171_s30, %s1584_s6 }
 0x26a   :  { %p1177_p7 = pnand %p1175_p6, %p1172_p5 }
 0x26c   :  { %1180 = shalt.err (!%p1177_p7)
}
 0x26d   :  { %766 = dma.vmem_to_hbm [thread:$0]  %s764_s25, 16, %s1584_s6, [#allocation3]  }
 0x26e   :  { %1181 = dma.done.wait [#allocation3], 16  }
 0x26f   :  { %1182 = vsyncadd [#allocation3], 4294967280 }
 0x270   :  { %770 = vsyncpa [#allocation3], 1 }

</bundles_post_ra>
